<compile_context>
chip_gen: v7x
topology: tpu7x:2x2x1
jax: 0.10.0
libtpu: 0.0.40
codegen_flags: <defaults>
</compile_context>

<pallas_src>
import functools

import jax
import jax.numpy as jnp
from jax.experimental import pallas as pl
from jax.experimental.pallas import tpu as pltpu


def _attention_kernel(g_ref, x_ref, wg_ref, wx_ref, b_ref, wp_ref, bp_ref,
                      o_ref):
    # Channels on sublanes, pixels on lanes (lane-dense loads/stores).
    # g_ref:  (1, F_g, T)   gate pixels          wg_ref: (C, F_g)
    # x_ref:  (1, F_l, T)   skip pixels          wx_ref: (C, F_l)
    # b_ref:  (C, 1)        folded (bg + bx)
    # wp_ref: (1, C)        folded psi weight    bp_ref: (1, 1)
    # o_ref:  (1, F_l, T)
    g = g_ref[0]                                   # (F_g, T)
    x = x_ref[0]                                   # (F_l, T)

    g1 = jnp.dot(wg_ref[...], g, preferred_element_type=jnp.float32)
    x1 = jnp.dot(wx_ref[...], x, preferred_element_type=jnp.float32)
    pre = jnp.maximum(g1 + x1 + b_ref[...], 0.0)   # ReLU, (C, T)
    logit = jnp.dot(wp_ref[...], pre,
                    preferred_element_type=jnp.float32) + bp_ref[...]  # (1, T)
    psi = jax.nn.sigmoid(logit)                    # (1, T), EUP exp/recip
    # Broadcast the attention coefficient over channels (sublanes).
    o_ref[0] = (x.astype(jnp.float32) * psi).astype(o_ref.dtype)


def _fold_bn(w, b, gamma, beta, mean, var, eps=1e-5):
    """Fold conv1x1 (w: [C_out, C_in], b: [C_out]) with BatchNorm2d(eval)."""
    scale = gamma / jnp.sqrt(var + eps)            # (C_out,)
    w_f = w * scale[:, None]                       # (C_out, C_in)
    b_f = scale * (b - mean) + beta                # (C_out,)
    return w_f, b_f


def _round_up(x, m):
    return (x + m - 1) // m * m


def _pick_tile(hw, f_g, f_l, n_coef, tile_hw, vmem_budget_bytes):
    """Largest 128-aligned pixel tile whose streamed working set fits VMEM."""
    # Per pixel-column bytes (f32): gate + skip + out (double-buffered by the
    # pipeline) plus the (C, T) intermediate held once.
    per_px = 4 * (2 * (f_g + 2 * f_l) + n_coef)
    cap = max(128, (vmem_budget_bytes // max(per_px, 1)) // 128 * 128)
    tile = min(int(tile_hw), cap, _round_up(hw, 128))
    return max(128, _round_up(tile, 128) if tile % 128 else tile)


@functools.partial(jax.jit, static_argnames=("tile_hw",))
def attention_block(gate, skip, params, tile_hw=4096):
    """gate: (B, F_g, H, W), skip: (B, F_l, H, W) -> (B, F_l, H, W)."""
    B, F_g, H, W = gate.shape
    _, F_l, _, _ = skip.shape
    HW = H * W

    wg, bg = _fold_bn(params["wg"], params["bg"], params["bn_g_gamma"],
                      params["bn_g_beta"], params["bn_g_mean"], params["bn_g_var"])
    wx, bx = _fold_bn(params["wx"], params["bx"], params["bn_x_gamma"],
                      params["bn_x_beta"], params["bn_x_mean"], params["bn_x_var"])
    wp, bp = _fold_bn(params["wp"], params["bp"], params["bn_p_gamma"],
                      params["bn_p_beta"], params["bn_p_mean"], params["bn_p_var"])
    C = wg.shape[0]  # n_coefficients

    # Flatten spatial dims only: contiguous collapse, no HBM transpose pass.
    g_flat = gate.reshape(B, F_g, HW)
    x_flat = skip.reshape(B, F_l, HW)

    # Pixel tile on the lane axis, sized against a conservative VMEM budget
    # (safe on v7x's smaller 64 MiB VMEM as well as v5e/v6e).
    vmem_budget = 24 * 1024 * 1024
    tile = _pick_tile(HW, F_g, F_l, C, tile_hw, vmem_budget)
    HW_pad = _round_up(HW, tile)
    if HW_pad != HW:
        pad = ((0, 0), (0, 0), (0, HW_pad - HW))
        g_flat = jnp.pad(g_flat, pad)
        x_flat = jnp.pad(x_flat, pad)

    # Weights oriented for (C_out, C_in) @ (C_in, pixels); single fused bias.
    wg_k = wg.astype(jnp.float32)                  # (C, F_g)
    wx_k = wx.astype(jnp.float32)                  # (C, F_l)
    bias = (bg + bx).reshape(C, 1).astype(jnp.float32)
    wp_k = wp.reshape(1, C).astype(jnp.float32)
    bp_k = bp.reshape(1, 1).astype(jnp.float32)

    grid = (B, HW_pad // tile)
    out_flat = pl.pallas_call(
        _attention_kernel,
        out_shape=jax.ShapeDtypeStruct((B, F_l, HW_pad), skip.dtype),
        grid_spec=pltpu.PrefetchScalarGridSpec(
            num_scalar_prefetch=0,
            grid=grid,
            in_specs=[
                pl.BlockSpec((1, F_g, tile), lambda b, j: (b, 0, j)),  # gate
                pl.BlockSpec((1, F_l, tile), lambda b, j: (b, 0, j)),  # skip
                pl.BlockSpec((C, F_g), lambda b, j: (0, 0)),           # wg
                pl.BlockSpec((C, F_l), lambda b, j: (0, 0)),           # wx
                pl.BlockSpec((C, 1), lambda b, j: (0, 0)),             # bg+bx
                pl.BlockSpec((1, C), lambda b, j: (0, 0)),             # wp
                pl.BlockSpec((1, 1), lambda b, j: (0, 0)),             # bp
            ],
            out_specs=pl.BlockSpec((1, F_l, tile), lambda b, j: (b, 0, j)),
        ),
        compiler_params=pltpu.CompilerParams(
            # Both grid axes are fully independent -> megacore sharding.
            dimension_semantics=("parallel", "parallel"),
            # Explicit budget well under the physical VMEM of every chip
            # (v7x: 64 MiB physical); the tile picker stays inside this.
            vmem_limit_bytes=32 * 1024 * 1024),
    )(g_flat, x_flat, wg_k, wx_k, bias, wp_k, bp_k)

    if HW_pad != HW:
        out_flat = out_flat[:, :, :HW]
    return out_flat.reshape(B, F_l, H, W)


def _reference(gate, skip, params):
    """Plain-JAX reference reproducing the PyTorch forward (BN in eval mode)."""
    wg, bg = _fold_bn(params["wg"], params["bg"], params["bn_g_gamma"],
                      params["bn_g_beta"], params["bn_g_mean"], params["bn_g_var"])
    wx, bx = _fold_bn(params["wx"], params["bx"], params["bn_x_gamma"],
                      params["bn_x_beta"], params["bn_x_mean"], params["bn_x_var"])
    wp, bp = _fold_bn(params["wp"], params["bp"], params["bn_p_gamma"],
                      params["bn_p_beta"], params["bn_p_mean"], params["bn_p_var"])
    g1 = jnp.einsum("bchw,oc->bohw", gate, wg) + bg[None, :, None, None]
    x1 = jnp.einsum("bchw,oc->bohw", skip, wx) + bx[None, :, None, None]
    psi_pre = jnp.maximum(g1 + x1, 0.0)
    logit = jnp.einsum("bchw,oc->bohw", psi_pre, wp) + bp[None, :, None, None]
    psi = jax.nn.sigmoid(logit)
    return skip * psi


def make_params(key, F_g, F_l, n_coef):
    ks = jax.random.split(key, 12)
    p = {
        "wg": jax.random.normal(ks[0], (n_coef, F_g), jnp.float32) * 0.2,
        "bg": jax.random.normal(ks[1], (n_coef,), jnp.float32) * 0.1,
        "wx": jax.random.normal(ks[2], (n_coef, F_l), jnp.float32) * 0.2,
        "bx": jax.random.normal(ks[3], (n_coef,), jnp.float32) * 0.1,
        "wp": jax.random.normal(ks[4], (1, n_coef), jnp.float32) * 0.2,
        "bp": jax.random.normal(ks[5], (1,), jnp.float32) * 0.1,
        # BatchNorm (eval mode) parameters / running stats
        "bn_g_gamma": 1.0 + 0.1 * jax.random.normal(ks[6], (n_coef,), jnp.float32),
        "bn_g_beta": 0.05 * jax.random.normal(ks[7], (n_coef,), jnp.float32),
        "bn_g_mean": 0.1 * jax.random.normal(ks[8], (n_coef,), jnp.float32),
        "bn_g_var": jnp.abs(1.0 + 0.1 * jax.random.normal(ks[9], (n_coef,), jnp.float32)),
        "bn_x_gamma": 1.0 + 0.1 * jax.random.normal(ks[10], (n_coef,), jnp.float32),
        "bn_x_beta": 0.05 * jax.random.normal(ks[11], (n_coef,), jnp.float32),
        "bn_x_mean": jnp.linspace(-0.1, 0.1, n_coef).astype(jnp.float32),
        "bn_x_var": jnp.full((n_coef,), 0.9, jnp.float32),
        "bn_p_gamma": jnp.array([1.1], jnp.float32),
        "bn_p_beta": jnp.array([0.02], jnp.float32),
        "bn_p_mean": jnp.array([0.05], jnp.float32),
        "bn_p_var": jnp.array([1.05], jnp.float32),
    }
    return p


if __name__ == "__main__":
    B, F_g, F_l, n_coef, H, W = 2, 4, 4, 8, 16, 16

    key = jax.random.PRNGKey(0)
    k_gate, k_skip, k_params = jax.random.split(key, 3)
    gate = jax.random.normal(k_gate, (B, F_g, H, W), jnp.float32)
    skip = jax.random.normal(k_skip, (B, F_l, H, W), jnp.float32)
    params = make_params(k_params, F_g, F_l, n_coef)

    out = attention_block(gate, skip, params)
    out = jax.block_until_ready(out)

    ref = _reference(gate, skip, params)
    assert out.shape == (B, F_l, H, W)
    assert jnp.allclose(out, ref, atol=1e-5, rtol=1e-5), "mismatch vs reference"

    print("KERNEL_OK")
</pallas_src>

<mosaic_0001>
module attributes {stable_mosaic.version = 11 : i64} {
  func.func @_attention_kernel(%arg0: i32, %arg1: i32, %arg2: memref<1x4x256xf32, #tpu.memory_space<vmem>>, %arg3: memref<1x4x256xf32, #tpu.memory_space<vmem>>, %arg4: memref<8x4xf32, #tpu.memory_space<vmem>>, %arg5: memref<8x4xf32, #tpu.memory_space<vmem>>, %arg6: memref<8x1xf32, #tpu.memory_space<vmem>>, %arg7: memref<1x8xf32, #tpu.memory_space<vmem>>, %arg8: memref<1x1xf32, #tpu.memory_space<vmem>>, %arg9: memref<1x4x256xf32, #tpu.memory_space<vmem>>) attributes {dimension_semantics = [#tpu.dimension_semantics<parallel>, #tpu.dimension_semantics<parallel>], iteration_bounds = array<i64: 2, 1>, scalar_prefetch = 0 : i64, scratch_operands = 0 : i64, tpu.core_type = #tpu.core_type<tc>, window_params = [{transform_indices = @transform_0, window_bounds = array<i64: 1, 4, 256>}, {transform_indices = @transform_1, window_bounds = array<i64: 1, 4, 256>}, {pipeline_mode = #tpu.pipeline_mode<synchronous>, transform_indices = @transform_2, window_bounds = array<i64: 8, 4>}, {pipeline_mode = #tpu.pipeline_mode<synchronous>, transform_indices = @transform_3, window_bounds = array<i64: 8, 4>}, {pipeline_mode = #tpu.pipeline_mode<synchronous>, transform_indices = @transform_4, window_bounds = array<i64: 8, 1>}, {pipeline_mode = #tpu.pipeline_mode<synchronous>, transform_indices = @transform_5, window_bounds = array<i64: 1, 8>}, {pipeline_mode = #tpu.pipeline_mode<synchronous>, transform_indices = @transform_6, window_bounds = array<i64: 1, 1>}, {transform_indices = @transform_7, window_bounds = array<i64: 1, 4, 256>}]} {
    %c0 = arith.constant 0 : index
    %c0_0 = arith.constant 0 : index
    %c0_1 = arith.constant 0 : index
    %0 = vector.load %arg2[%c0, %c0_0, %c0_1] : memref<1x4x256xf32, #tpu.memory_space<vmem>>, vector<1x4x256xf32>
    %1 = vector.shape_cast %0 : vector<1x4x256xf32> to vector<4x256xf32>
    %c0_2 = arith.constant 0 : index
    %c0_3 = arith.constant 0 : index
    %c0_4 = arith.constant 0 : index
    %2 = vector.load %arg3[%c0_2, %c0_3, %c0_4] : memref<1x4x256xf32, #tpu.memory_space<vmem>>, vector<1x4x256xf32>
    %3 = vector.shape_cast %2 : vector<1x4x256xf32> to vector<4x256xf32>
    %c0_5 = arith.constant 0 : index
    %c0_6 = arith.constant 0 : index
    %4 = vector.load %arg4[%c0_5, %c0_6] : memref<8x4xf32, #tpu.memory_space<vmem>>, vector<8x4xf32>
    %cst = arith.constant dense<0.000000e+00> : vector<8x256xf32>
    %5 = tpu.matmul %4, %1, %cst {dimension_numbers = #tpu.dot_dimension_numbers<[1], [0], [0], [1], [0, 0, 1, 1], [], []>} : vector<8x4xf32>, vector<4x256xf32>, vector<8x256xf32> -> vector<8x256xf32>
    %c0_7 = arith.constant 0 : index
    %c0_8 = arith.constant 0 : index
    %6 = vector.load %arg5[%c0_7, %c0_8] : memref<8x4xf32, #tpu.memory_space<vmem>>, vector<8x4xf32>
    %cst_9 = arith.constant dense<0.000000e+00> : vector<8x256xf32>
    %7 = tpu.matmul %6, %3, %cst_9 {dimension_numbers = #tpu.dot_dimension_numbers<[1], [0], [0], [1], [0, 0, 1, 1], [], []>} : vector<8x4xf32>, vector<4x256xf32>, vector<8x256xf32> -> vector<8x256xf32>
    %8 = arith.addf %5, %7 : vector<8x256xf32>
    %c0_10 = arith.constant 0 : index
    %c0_11 = arith.constant 0 : index
    %9 = vector.load %arg6[%c0_10, %c0_11] : memref<8x1xf32, #tpu.memory_space<vmem>>, vector<8x1xf32>
    %10 = vector.broadcast %9 : vector<8x1xf32> to vector<8x256xf32>
    %11 = arith.addf %8, %10 : vector<8x256xf32>
    %cst_12 = arith.constant 0.000000e+00 : f32
    %12 = vector.broadcast %cst_12 : f32 to vector<8x256xf32>
    %13 = arith.maximumf %11, %12 : vector<8x256xf32>
    %c0_13 = arith.constant 0 : index
    %c0_14 = arith.constant 0 : index
    %14 = vector.load %arg7[%c0_13, %c0_14] : memref<1x8xf32, #tpu.memory_space<vmem>>, vector<1x8xf32>
    %cst_15 = arith.constant dense<0.000000e+00> : vector<1x256xf32>
    %15 = tpu.matmul %14, %13, %cst_15 {dimension_numbers = #tpu.dot_dimension_numbers<[1], [0], [0], [1], [0, 0, 1, 1], [], []>} : vector<1x8xf32>, vector<8x256xf32>, vector<1x256xf32> -> vector<1x256xf32>
    %c0_16 = arith.constant 0 : index
    %c0_17 = arith.constant 0 : index
    %16 = vector.load %arg8[%c0_16, %c0_17] : memref<1x1xf32, #tpu.memory_space<vmem>>, vector<1x1xf32>
    %17 = vector.broadcast %16 : vector<1x1xf32> to vector<1x256xf32>
    %18 = arith.addf %15, %17 : vector<1x256xf32>
    %19 = arith.negf %18 : vector<1x256xf32>
    %20 = math.exp %19 : vector<1x256xf32>
    %cst_18 = arith.constant 1.000000e+00 : f32
    %21 = vector.broadcast %cst_18 : f32 to vector<1x256xf32>
    %22 = arith.addf %21, %20 : vector<1x256xf32>
    %23 = arith.divf %21, %22 : vector<1x256xf32>
    %24 = vector.broadcast %23 : vector<1x256xf32> to vector<4x256xf32>
    %25 = arith.mulf %3, %24 : vector<4x256xf32>
    %c0_19 = arith.constant 0 : index
    %c0_20 = arith.constant 0 : index
    %c0_21 = arith.constant 0 : index
    %26 = vector.load %arg9[%c0_19, %c0_20, %c0_21] : memref<1x4x256xf32, #tpu.memory_space<vmem>>, vector<1x4x256xf32>
    %27 = vector.shape_cast %26 : vector<1x4x256xf32> to vector<4x256xf32>
    %28 = vector.shape_cast %25 : vector<4x256xf32> to vector<1x4x256xf32>
    tpu.vector_store %arg9[%c0_19, %c0_20, %c0_21], %28 {strides = array<i32>} : memref<1x4x256xf32, #tpu.memory_space<vmem>>, vector<1x4x256xf32>,
    return
  }
  func.func @transform_0(%arg0: i32, %arg1: i32) -> (i32, i32, i32) {
    %c0_i32 = arith.constant 0 : i32
    %c0_i32_0 = arith.constant 0 : i32
    return %arg0, %c0_i32, %arg1 : i32, i32, i32
  }
  func.func @transform_1(%arg0: i32, %arg1: i32) -> (i32, i32, i32) {
    %c0_i32 = arith.constant 0 : i32
    %c0_i32_0 = arith.constant 0 : i32
    return %arg0, %c0_i32, %arg1 : i32, i32, i32
  }
  func.func @transform_2(%arg0: i32, %arg1: i32) -> (i32, i32) {
    %c0_i32 = arith.constant 0 : i32
    %c0_i32_0 = arith.constant 0 : i32
    %c0_i32_1 = arith.constant 0 : i32
    return %c0_i32, %c0_i32_0 : i32, i32
  }
  func.func @transform_3(%arg0: i32, %arg1: i32) -> (i32, i32) {
    %c0_i32 = arith.constant 0 : i32
    %c0_i32_0 = arith.constant 0 : i32
    %c0_i32_1 = arith.constant 0 : i32
    return %c0_i32, %c0_i32_0 : i32, i32
  }
  func.func @transform_4(%arg0: i32, %arg1: i32) -> (i32, i32) {
    %c0_i32 = arith.constant 0 : i32
    %c0_i32_0 = arith.constant 0 : i32
    %c0_i32_1 = arith.constant 0 : i32
    return %c0_i32, %c0_i32_0 : i32, i32
  }
  func.func @transform_5(%arg0: i32, %arg1: i32) -> (i32, i32) {
    %c0_i32 = arith.constant 0 : i32
    %c0_i32_0 = arith.constant 0 : i32
    %c0_i32_1 = arith.constant 0 : i32
    return %c0_i32, %c0_i32_0 : i32, i32
  }
  func.func @transform_6(%arg0: i32, %arg1: i32) -> (i32, i32) {
    %c0_i32 = arith.constant 0 : i32
    %c0_i32_0 = arith.constant 0 : i32
    %c0_i32_1 = arith.constant 0 : i32
    return %c0_i32, %c0_i32_0 : i32, i32
  }
  func.func @transform_7(%arg0: i32, %arg1: i32) -> (i32, i32, i32) {
    %c0_i32 = arith.constant 0 : i32
    %c0_i32_0 = arith.constant 0 : i32
    return %arg0, %c0_i32, %arg1 : i32, i32, i32
  }
}

</mosaic_0001>

<bundles_post_ra>
// kernel: attention_block.1
= control target key start
LH: loop header
LB: loop body
LE: loop exit
PB: predicated region body
PF: predicated region fallthrough
CT: control target
= control target key end

     0   :  { %s882_s26 = smov 0   ;;  %s884_s27 = smov 0   ;;  %s935_s0 = inlined_call_operand.vmem [shape: f32[2,4,256], index: 0, kind: input, shape index: {}]   ;;  %s936_s1 = inlined_call_operand.vmem [shape: f32[2,4,256], index: 1, kind: input, shape index: {}]   ;;  %s937_s2 = inlined_call_operand.vmem [shape: f32[8,4], index: 2, kind: input, shape index: {}]   ;;  %s938_s3 = inlined_call_operand.vmem [shape: f32[8,4], index: 3, kind: input, shape index: {}]   ;;  %s939_s4 = inlined_call_operand.vmem [shape: f32[8,1], index: 4, kind: input, shape index: {}]   ;;  %s940_s5 = inlined_call_operand.vmem [shape: f32[1,8], index: 5, kind: input, shape index: {}]   ;;  %s941_s6 = inlined_call_operand.<no memory space> [shape: f32[1,1], index: 6, kind: input, shape index: {}]   ;;  %s942_s7 = inlined_call_operand.vmem [shape: f32[2,4,256], index: 7, kind: output, shape index: {}]  }
   0x1   :  { %v12_v0 = vstv %s941_s6  ;;  %s886_s28 = smov 0  }
   0x2   :  { %13 = vst [vmem:[#allocation2] sm:$0x1] %v12_v0 }
   0x3 LB: > { %s31_s6 = sadd.s32 1, %s831_s27  ;;  %p753_p0 = scmp.ge.s32.totalorder %s835_s28, 1  ;;  %s835_s28 = sphi %s886_s28, %s19_s28   ;;  %s831_s27 = sphi %s884_s27, %s944_s27   ;;  %s827_s26 = sphi %s882_s26, %s943_s26  }
   0x4   : > { %p33_p1 = scmp.ge.s32.totalorder %s31_s6, 2  ;;  %p277_p2 = scmp.lt.s32.totalorder %s835_s28, 3 }
   0x6   : > { %s946_s6 = smov (%p33_p1, %s31_s6), 0  ;;  %p278_p3 = pnand %p753_p0, %p277_p2 }
   0x7   : > { %p327_p4 = scmp.lt.s32.totalorder (!%p278_p3), %s827_s26, 1  ;;  %v837_v1 = vmov (!%p278_p3), 0.0   ;;  %v522_v2 = vld [vmem:[%s939_s4] sm:$0xff] (!%p278_p3)  ;;  %v838_v3 = vmov (!%p278_p3), 0   ;;  %vm366_vm0 = vcmask (!%p278_p3), 1043456   ;;  %vm362_vm1 = vcmask (!%p278_p3), 31744  }
   0x8   : > { %281 = sbr.rel (%p278_p3) target bundleno = 498 (0x1f2), region = 48  ;;  %435 = vmatprep.mubr.f32.mxu0 (!%p278_p3), %v837_v1  ;;  %611 = vmatprep.mubr.f32.mxu1 (!%p278_p3), %v837_v1  ;;  %v359_v9 = vld [vmem:[%s938_s3] sm:$0xff] (!%p278_p3)  ;;  %vm543_vm2 = vcmask (!%p278_p3), 64512   ;;  %v539_v19 = vlaneseq (!%p278_p3) }
   0x9   : > { %802 = vset.pattern.permute.xlu0 (!%p278_p3), %v838_v3  ;;  %v533_v4 = vld [vmem:[#allocation2] sm:$0x1] (!%p278_p3) }
   0xa   : > { %525 = vperm.xlu0 (!%p278_p3), %802, %v522_v2   ;;  %v358_v10 = vld [vmem:[%s937_s2] sm:$0xff] (!%p278_p3)  ;;  %v540_v20 = vshrl.u32 (!%p278_p3), %v539_v19, 7 }
   0xb   : > { %v532_v18 = vld [vmem:[%s940_s5] sm:$0x1] (!%p278_p3) }
   0xc   : > { %v541_v21 = vsub.s32 (!%p278_p3), 0, %v540_v20 }
   0xe   : > { %536 = vperm.xlu0 (!%p278_p3), %802, %v533_v4  }
   0xf   : > { %s948_s26 = smov (!%p327_p4, %s827_s26), 1 }
  0x10   : > { %s903_s8 = sshll.u32 %s948_s26, 3 }
  0x11   : > { %s334_s11 = scalar_lea.vmem %s935_s0, %s903_s8  ;;  %s344_s14 = scalar_lea.vmem %s936_s1, %s903_s8 }
  0x12   : > { %v357_v5 = vld [vmem:[%s344_s14] sm:$0xff]  ;;  %s354_s23 = scalar_lea.vmem %s942_s7, %s903_s8 }
  0x13   : > { %v356_v6 = vld [vmem:[%s334_s11] sm:$0xff]  ;;  %v361_v7 = vcombine.high %v357_v5, %v357_v5 }
  0x14   : > { %v443_v8 = vcombine.high %v356_v6, %v356_v6 }
  0x15   : > { %760 = vmatprep.subr.msk.mxu0 %vm366_vm0, %v361_v7 }
  0x16   : > { %761 = vmatpush1.msk.msra.mxu0 %vm366_vm0, %v357_v5 }
  0x17   : > { %762 = vmatmul.mubr.msk.f32.vlgmr.msra.gmra.mrb[0].mxu0 %vm362_vm1, %v359_v9  ;;  %763 = vmatprep.subr.msk.mxu0 %vm366_vm0, %v443_v8 }
  0x18   : > { %764 = vmatpush1.msk.msra.mxu0 %vm366_vm0, %v356_v6  ;;  %515 = vmatprep.mubr.f32.mxu0 %v837_v1 }
  0x1f   : > { %765 = vmatmul.mubr.msk.f32.vlgmr.msra.gmra.mrb[0].mxu0 %vm362_vm1, %v358_v10 }
  0x89   : > { %v526_v11 = vpop.permute.xlu0 %525 }
  0x8d   : > { %v537_v22 = vpop.permute.xlu0 %536 }
  0x8e   : > { %v542_v23 = vrot.slane %v537_v22, %v541_v21 }
  0xf2   : > { %v517_v12 = vpop.f32.mrb[0].mxu0 }
  0xf3   : > { %v528_v13 = vadd.f32 %v526_v11, %v517_v12  ;;  %v519_v14 = vpop.f32.mrb[1].mxu0 }
  0xf4   : > { %v529_v15 = vadd.f32 %v526_v11, %v519_v14 }
  0xf5   : > { %v530_v17 = vmax.f32 %v528_v13, 0.0 }
  0xf6   : > { %v531_v16 = vmax.f32 %v529_v15, 0.0 }
  0xf8   : > { %547 = vmatprep.subr.mxu1 %v531_v16 }
  0xf9   : > { %548 = vmatpush1.msra.mxu1 %v530_v17 }
  0xfa   : > { %766 = vmatmul.mubr.msk.f32.vlgmr.msra.gmra.mrb[0].mxu1 %vm543_vm2, %v532_v18 }
 0x1cd   : > { %v613_v24 = vpop.f32.mrb[0].mxu1 }
 0x1ce   : > { %v614_v25 = vadd.f32 %v613_v24, %v542_v23  ;;  %v615_v26 = vpop.f32.mrb[1].mxu1 }
 0x1cf   : > { %v616_v27 = vadd.f32 %v615_v26, %v542_v23 }
 0x1d0   : > { %v767_v28 = vmul.f32 -1.442695, %v614_v25 }
 0x1d1   : > { %v768_v29 = vmul.f32 -1.442695, %v616_v27 }
 0x1d2   : > { %805 = vpow2.f32 %v767_v28 }
 0x1d3   : > { %807 = vpow2.f32 %v768_v29 }
 0x1dc   : > { %v806_v30 = vpop.eup %805 }
 0x1dd   : > { %v808_v31 = vpop.eup %807  ;;  %v624_v32 = vadd.f32 1.0, %v806_v30 }
 0x1de   : > { %v625_v33 = vadd.f32 1.0, %v808_v31 }
 0x1df   : > { %809 = vrcp.f32 %v624_v32 }
 0x1e0   : > { %811 = vrcp.f32 %v625_v33 }
 0x1e9   : > { %v810_v34 = vpop.eup %809 }
 0x1ea   : > { %v812_v35 = vpop.eup %811  ;;  %v633_v36 = vrot.slane %v810_v34, %v541_v21 }
 0x1eb   : > { %v637_v37 = vrot.slane %v812_v35, %v541_v21 }
 0x1ed   : > { %v640_v38 = vcombine.low %v633_v36, %v637_v37 }
 0x1ef   : > { %v642_v39 = vmul.f32 %v640_v38, %v357_v5 }
 0x1f1   : > { %643 = vst [vmem:[%s354_s23] sm:$0xff] %v642_v39 }
 0x1f2 PF: > { %s19_s28 = sadd.s32 1, %s835_s28   ;;  %s943_s26 = smov %s831_s27 }
 0x1f3   : > { %p16_p5 = scmp.ge.s32.totalorder %s19_s28, 4   ;;  %s944_s27 = smov %s946_s6 }
 0x1f5   :  { %18 = sbr.rel (!%p16_p5) target bundleno = 3 (0x3), region = 81 }

</bundles_post_ra>
